<compile_context>
chip_gen: v7x
topology: tpu7x:2x2x1
jax: 0.10.0
libtpu: 0.0.40
codegen_flags: <defaults>
</compile_context>

<pallas_src>
import functools

import jax
import jax.numpy as jnp
from jax.experimental import pallas as pl
from jax.experimental.pallas import tpu as pltpu


def _round_up(x, m):
    return (x + m - 1) // m * m


# ---------------------------------------------------------------------------
# Pass 1: conv-as-matmul on the MXU + per-channel partial batch statistics.
# Only the tiny (G, 1, Cp) sums / sums-of-squares go to HBM -- no conv slab.
# ---------------------------------------------------------------------------
def _conv_stats_kernel(p_ref, w_ref, sum_ref, sumsq_ref):
    # p_ref:     (TM, Kp)    im2col patch tile (matmul dtype)
    # w_ref:     (Kp, Cp)    folded conv weight (matmul dtype), Cp multiple of 128
    # sum_ref:   (1, 1, Cp)  f32 per-tile channel sums
    # sumsq_ref: (1, 1, Cp)  f32 per-tile channel sums of squares
    acc = jnp.dot(p_ref[...], w_ref[...], preferred_element_type=jnp.float32)
    sum_ref[0] = jnp.sum(acc, axis=0, keepdims=True)          # (1, Cp) row write
    sumsq_ref[0] = jnp.sum(acc * acc, axis=0, keepdims=True)  # (1, Cp) row write


# ---------------------------------------------------------------------------
# Pass 2: recompute the conv matmul and apply the pre-folded BN scale/shift
# plus PReLU.  Output is stored unpadded (TM, Cout).
# ---------------------------------------------------------------------------
def _conv_bn_prelu_kernel(p_ref, w_ref, scale_ref, shift_ref, alpha_ref, o_ref,
                          *, cout):
    acc = jnp.dot(p_ref[...], w_ref[...], preferred_element_type=jnp.float32)
    y = acc * scale_ref[...] + shift_ref[...]        # single fused scale/shift pass
    y = jnp.where(y > 0.0, y, alpha_ref[...] * y)    # PReLU (per-channel alpha)
    o_ref[...] = y[:, :cout].astype(o_ref.dtype)     # drop lane padding at the store


# ---------------------------------------------------------------------------
# Wrapper: NCHW in / NCHW out, PyTorch-style parameters.
# ---------------------------------------------------------------------------
def conv2d_pxp_forward(x_nchw, weight_oihw, bias, gamma, beta, alpha, *,
                       stride, padding, eps=1e-5,
                       matmul_dtype=jnp.bfloat16, tile_m=512):
    """Forward pass of Conv2D_pxp (conv -> batch-stat BN -> PReLU)."""
    N, Cin, H, W = x_nchw.shape
    Cout, _, k, _ = weight_oihw.shape
    Ho = (H + 2 * padding - k) // stride + 1
    Wo = (W + 2 * padding - k) // stride + 1
    M = N * Ho * Wo
    K = k * k * Cin

    # The conv bias is exactly cancelled by the training-mode BN mean subtraction
    # (mean(conv + b) = mean(conv) + b, variance unchanged), so it is dropped.
    # NOTE: the batch statistics are only correct because (a) the bias is dropped
    # here and (b) all Mp-M / Kp-K padded entries are exactly zero while the 1/M
    # normalisation counts only the real rows.  Do not reintroduce a bias or a
    # non-zero pad inside the kernels.
    del bias

    # ---- Layout glue (plain JAX): NCHW->NHWC, zero pad, im2col patch gather. ----
    x_nhwc = jnp.transpose(x_nchw, (0, 2, 3, 1)).astype(matmul_dtype)
    x_pad = jnp.pad(x_nhwc, ((0, 0), (padding, padding), (padding, padding), (0, 0)))
    taps = []
    for kh in range(k):
        for kw in range(k):
            taps.append(jax.lax.slice(
                x_pad,
                (0, kh, kw, 0),
                (N, kh + (Ho - 1) * stride + 1, kw + (Wo - 1) * stride + 1, Cin),
                (1, stride, stride, 1)))             # (N, Ho, Wo, Cin)
    patches = jnp.concatenate(taps, axis=-1).reshape(M, K)   # (M, k*k*Cin)

    # Weight folded to (K, Cout) matching the (kh, kw, cin) patch ordering.
    w2 = jnp.transpose(weight_oihw, (2, 3, 1, 0)).reshape(K, Cout).astype(matmul_dtype)

    # ---- Pad to MXU / lane friendly shapes. ----
    Cp = _round_up(Cout, 128)                        # lane-dense compute channels
    k_align = 8 * (4 // jnp.dtype(matmul_dtype).itemsize)   # 8 for f32, 16 for bf16
    Kp = _round_up(K, k_align)                       # contraction dim, packed-row ok
    TM = tile_m if M >= tile_m else max(8, _round_up(M, 8))
    Mp = _round_up(M, TM)
    G = Mp // TM                                     # number of row tiles

    patches_p = jnp.pad(patches, ((0, Mp - M), (0, Kp - K)))
    w_p = jnp.pad(w2, ((0, Kp - K), (0, Cp - Cout)))
    gamma_p = jnp.pad(gamma.astype(jnp.float32), (0, Cp - Cout)).reshape(1, Cp)
    beta_p = jnp.pad(beta.astype(jnp.float32), (0, Cp - Cout)).reshape(1, Cp)
    alpha_p = jnp.pad(alpha.astype(jnp.float32), (0, Cp - Cout)).reshape(1, Cp)

    cparams = pltpu.CompilerParams(
        dimension_semantics=("parallel",),           # megacore-shardable row tiles
        vmem_limit_bytes=48 * 1024 * 1024,           # < v7x 64 MiB/TC, > v5e default
    )

    # ---- Pass 1: per-tile channel sum / sum-of-squares (no conv slab to HBM). ----
    sums, sumsqs = pl.pallas_call(
        _conv_stats_kernel,
        grid=(G,),
        in_specs=[
            pl.BlockSpec((TM, Kp), lambda i: (i, 0)),
            pl.BlockSpec((Kp, Cp), lambda i: (0, 0)),
        ],
        out_specs=(
            pl.BlockSpec((1, 1, Cp), lambda i: (i, 0, 0)),
            pl.BlockSpec((1, 1, Cp), lambda i: (i, 0, 0)),
        ),
        out_shape=(
            jax.ShapeDtypeStruct((G, 1, Cp), jnp.float32),
            jax.ShapeDtypeStruct((G, 1, Cp), jnp.float32),
        ),
        compiler_params=cparams,
    )(patches_p, w_p)

    # ---- Fold batch stats into one per-channel scale/shift (tiny, plain JAX). ----
    # One-pass variance (E[x^2] - E[x]^2) in f32, clamped >= 0.  For activations
    # with |mean| >> std at very large M, a shifted / two-pass variance over the
    # tile stats would be more robust.
    mean = jnp.sum(sums, axis=0) / M                 # (1, Cp)
    ex2 = jnp.sum(sumsqs, axis=0) / M                # (1, Cp)
    var = jnp.maximum(ex2 - mean * mean, 0.0)
    scale = gamma_p * jax.lax.rsqrt(var + eps)       # (1, Cp)
    shift = beta_p - mean * scale                    # (1, Cp)

    # ---- Pass 2: recompute conv matmul + BN + PReLU, streaming, unpadded out. ----
    kernel2 = functools.partial(_conv_bn_prelu_kernel, cout=Cout)
    y = pl.pallas_call(
        kernel2,
        grid=(G,),
        in_specs=[
            pl.BlockSpec((TM, Kp), lambda i: (i, 0)),
            pl.BlockSpec((Kp, Cp), lambda i: (0, 0)),
            pl.BlockSpec((1, Cp), lambda i: (0, 0)),
            pl.BlockSpec((1, Cp), lambda i: (0, 0)),
            pl.BlockSpec((1, Cp), lambda i: (0, 0)),
        ],
        out_specs=pl.BlockSpec((TM, Cout), lambda i: (i, 0)),
        out_shape=jax.ShapeDtypeStruct((Mp, Cout), jnp.float32),
        compiler_params=cparams,
    )(patches_p, w_p, scale, shift, alpha_p)

    # NHWC consumers could take y[:M].reshape(N, Ho, Wo, Cout) directly; the NCHW
    # transpose is kept only to match the PyTorch module's output layout.
    out = y[:M].reshape(N, Ho, Wo, Cout)
    return jnp.transpose(out, (0, 3, 1, 2))          # back to NCHW


def _reference(x_nchw, weight_oihw, bias, gamma, beta, alpha, *, stride, padding,
               eps=1e-5, matmul_dtype=jnp.float32):
    """Pure-JAX reference (lax conv + batch-stats BN + PReLU) for validation."""
    y = jax.lax.conv_general_dilated(
        x_nchw.astype(matmul_dtype), weight_oihw.astype(matmul_dtype),
        window_strides=(stride, stride),
        padding=((padding, padding), (padding, padding)),
        dimension_numbers=("NCHW", "OIHW", "NCHW"),
        preferred_element_type=jnp.float32,
    ) + bias[None, :, None, None]
    mean = jnp.mean(y, axis=(0, 2, 3), keepdims=True)
    var = jnp.mean((y - mean) ** 2, axis=(0, 2, 3), keepdims=True)
    y = (y - mean) * jax.lax.rsqrt(var + eps)
    y = y * gamma[None, :, None, None] + beta[None, :, None, None]
    a = alpha[None, :, None, None]
    return jnp.where(y > 0, y, a * y)


if __name__ == "__main__":
    # Module config: Conv2D_pxp(in_ch=4, out_ch=8, k=3, s=1, p=1)
    in_ch, out_ch, k, s, p = 4, 8, 3, 1, 1
    N, H, W = 2, 16, 16

    key = jax.random.PRNGKey(0)
    kx, kw, kb, kg, kbe = jax.random.split(key, 5)

    x = jax.random.normal(kx, (N, in_ch, H, W), dtype=jnp.float32)

    # Deterministic parameter init (synthetic; shapes match nn.Conv2d/BatchNorm2d/PReLU).
    fan_in = in_ch * k * k
    bound = 1.0 / (fan_in ** 0.5)
    weight = jax.random.uniform(kw, (out_ch, in_ch, k, k), jnp.float32, -bound, bound)
    bias = jax.random.uniform(kb, (out_ch,), jnp.float32, -bound, bound)
    gamma = 1.0 + 0.1 * jax.random.normal(kg, (out_ch,), jnp.float32)   # BN weight
    beta = 0.1 * jax.random.normal(kbe, (out_ch,), jnp.float32)         # BN bias
    alpha = jnp.full((out_ch,), 0.25, dtype=jnp.float32)                # PReLU init

    # f32 matmul-operand path: tight check against the pure-JAX reference.
    out_f32 = conv2d_pxp_forward(x, weight, bias, gamma, beta, alpha,
                                 stride=s, padding=p, matmul_dtype=jnp.float32)
    out_f32 = jax.block_until_ready(out_f32)
    ref_f32 = _reference(x, weight, bias, gamma, beta, alpha,
                         stride=s, padding=p, matmul_dtype=jnp.float32)
    assert out_f32.shape == (N, out_ch, H, W)
    assert jnp.allclose(out_f32, ref_f32, atol=1e-4, rtol=1e-4), \
        "Pallas kernel (f32) mismatch vs reference"

    # bf16 matmul-operand path (MXU-native on v5e/v6e/v7x); the reference uses the
    # same bf16 operand cast so the comparison is apples-to-apples.
    out_bf16 = conv2d_pxp_forward(x, weight, bias, gamma, beta, alpha,
                                  stride=s, padding=p, matmul_dtype=jnp.bfloat16)
    out_bf16 = jax.block_until_ready(out_bf16)
    ref_bf16 = _reference(x, weight, bias, gamma, beta, alpha,
                          stride=s, padding=p, matmul_dtype=jnp.bfloat16)
    assert jnp.allclose(out_bf16, ref_bf16, atol=2e-3, rtol=2e-3), \
        "Pallas kernel (bf16 operands) mismatch vs reference"

    print("KERNEL_OK")
</pallas_src>

<mosaic_0001>
module attributes {stable_mosaic.version = 11 : i64} {
  func.func @_conv_stats_kernel(%arg0: i32, %arg1: memref<512x40xf32, #tpu.memory_space<vmem>>, %arg2: memref<40x128xf32, #tpu.memory_space<vmem>>, %arg3: memref<1x1x128xf32, #tpu.memory_space<vmem>>, %arg4: memref<1x1x128xf32, #tpu.memory_space<vmem>>) attributes {dimension_semantics = [#tpu.dimension_semantics<parallel>], iteration_bounds = array<i64: 1>, scalar_prefetch = 0 : i64, scratch_operands = 0 : i64, tpu.core_type = #tpu.core_type<tc>, window_params = [{transform_indices = @transform_0, window_bounds = array<i64: 512, 40>}, {pipeline_mode = #tpu.pipeline_mode<synchronous>, transform_indices = @transform_1, window_bounds = array<i64: 40, 128>}, {transform_indices = @transform_2, window_bounds = array<i64: 1, 1, 128>}, {transform_indices = @transform_3, window_bounds = array<i64: 1, 1, 128>}]} {
    %c0 = arith.constant 0 : index
    %c0_0 = arith.constant 0 : index
    %0 = vector.load %arg1[%c0, %c0_0] : memref<512x40xf32, #tpu.memory_space<vmem>>, vector<512x40xf32>
    %c0_1 = arith.constant 0 : index
    %c0_2 = arith.constant 0 : index
    %1 = vector.load %arg2[%c0_1, %c0_2] : memref<40x128xf32, #tpu.memory_space<vmem>>, vector<40x128xf32>
    %cst = arith.constant dense<0.000000e+00> : vector<512x128xf32>
    %2 = tpu.matmul %0, %1, %cst {dimension_numbers = #tpu.dot_dimension_numbers<[1], [0], [0], [1], [0, 0, 1, 1], [], []>} : vector<512x40xf32>, vector<40x128xf32>, vector<512x128xf32> -> vector<512x128xf32>
    %cst_3 = arith.constant dense<0.000000e+00> : vector<128xf32>
    %3 = vector.multi_reduction <add>, %2, %cst_3 [0] : vector<512x128xf32> to vector<128xf32>
    %4 = vector.shape_cast %3 : vector<128xf32> to vector<1x128xf32>
    %c0_4 = arith.constant 0 : index
    %c0_5 = arith.constant 0 : index
    %c0_6 = arith.constant 0 : index
    %5 = vector.load %arg3[%c0_4, %c0_5, %c0_6] : memref<1x1x128xf32, #tpu.memory_space<vmem>>, vector<1x1x128xf32>
    %6 = vector.shape_cast %5 : vector<1x1x128xf32> to vector<1x128xf32>
    %7 = vector.shape_cast %4 : vector<1x128xf32> to vector<1x1x128xf32>
    tpu.vector_store %arg3[%c0_4, %c0_5, %c0_6], %7 {strides = array<i32>} : memref<1x1x128xf32, #tpu.memory_space<vmem>>, vector<1x1x128xf32>,
    %8 = arith.mulf %2, %2 : vector<512x128xf32>
    %cst_7 = arith.constant dense<0.000000e+00> : vector<128xf32>
    %9 = vector.multi_reduction <add>, %8, %cst_7 [0] : vector<512x128xf32> to vector<128xf32>
    %10 = vector.shape_cast %9 : vector<128xf32> to vector<1x128xf32>
    %c0_8 = arith.constant 0 : index
    %c0_9 = arith.constant 0 : index
    %c0_10 = arith.constant 0 : index
    %11 = vector.load %arg4[%c0_8, %c0_9, %c0_10] : memref<1x1x128xf32, #tpu.memory_space<vmem>>, vector<1x1x128xf32>
    %12 = vector.shape_cast %11 : vector<1x1x128xf32> to vector<1x128xf32>
    %13 = vector.shape_cast %10 : vector<1x128xf32> to vector<1x1x128xf32>
    tpu.vector_store %arg4[%c0_8, %c0_9, %c0_10], %13 {strides = array<i32>} : memref<1x1x128xf32, #tpu.memory_space<vmem>>, vector<1x1x128xf32>,
    return
  }
  func.func @transform_0(%arg0: i32) -> (i32, i32) {
    %c0_i32 = arith.constant 0 : i32
    %c0_i32_0 = arith.constant 0 : i32
    return %arg0, %c0_i32 : i32, i32
  }
  func.func @transform_1(%arg0: i32) -> (i32, i32) {
    %c0_i32 = arith.constant 0 : i32
    %c0_i32_0 = arith.constant 0 : i32
    %c0_i32_1 = arith.constant 0 : i32
    return %c0_i32, %c0_i32_0 : i32, i32
  }
  func.func @transform_2(%arg0: i32) -> (i32, i32, i32) {
    %c0_i32 = arith.constant 0 : i32
    %c0_i32_0 = arith.constant 0 : i32
    %c0_i32_1 = arith.constant 0 : i32
    return %arg0, %c0_i32, %c0_i32_0 : i32, i32, i32
  }
  func.func @transform_3(%arg0: i32) -> (i32, i32, i32) {
    %c0_i32 = arith.constant 0 : i32
    %c0_i32_0 = arith.constant 0 : i32
    %c0_i32_1 = arith.constant 0 : i32
    return %arg0, %c0_i32, %c0_i32_0 : i32, i32, i32
  }
}

</mosaic_0001>

<bundles_post_ra>
// kernel: tpu_custom_call.1
= control target key start
LH: loop header
LB: loop body
LE: loop exit
PB: predicated region body
PF: predicated region fallthrough
CT: control target
= control target key end

     0   :  { %9 = vsyncpa [#allocation3], 0  ;;  %vm84_vm0 = vcmask 326656   ;;  %s1682_s0 = inlined_call_operand.vmem [shape: f32[512,40], index: 0, kind: input, shape index: {}]   ;;  %s1683_s1 = inlined_call_operand.vmem [shape: f32[40,128], index: 1, kind: input, shape index: {}]   ;;  %s1684_s2 = inlined_call_operand.hbm [shape: f32[1,1,128], index: 2, kind: output, shape index: {0}]   ;;  %s1685_s3 = inlined_call_operand.hbm [shape: f32[1,1,128], index: 3, kind: output, shape index: {1}]  }
   0x1   :  { %v79_v0 = vld [vmem:[%s1683_s1] sm:$0xff]  ;;  %v80_v1 = vld [vmem:[%s1683_s1 + $0x8] sm:$0xff]  ;;  %v81_v2 = vld [vmem:[%s1683_s1 + $0x10] sm:$0xff] }
   0x2   :  { %v1133_v3 = vpack.c.bf16 %v80_v1, %v79_v0  ;;  %v82_v4 = vld [vmem:[%s1683_s1 + $0x18] sm:$0xff]  ;;  %v15_v5 = vld [vmem:[%s1682_s0] sm:$0xff]  ;;  %v16_v8 = vld [vmem:[%s1682_s0 + $0x8] sm:$0xff] }
   0x3   :  { %v1137_v6 = vpack.c.bf16 %v82_v4, %v81_v2  ;;  %1037 = vmatprep.mubr.msk.f32.mxu0 %vm84_vm0, %v15_v5  ;;  %v83_v7 = vld [vmem:[%s1683_s1 + $0x20] sm:$0xff]  ;;  %v17_v9 = vld [vmem:[%s1682_s0 + $0x10] sm:$0xff]  ;;  %v48_v11 = vld [vmem:[%s1682_s0 + $0x108] sm:$0xff] }
   0x4   :  { %1134 = vmatprep.subr.bf16.mxu0 %v1133_v3  ;;  %1141 = vmatprep.subr.bf16.mxu1 %v1133_v3  ;;  %v47_v10 = vld [vmem:[%s1682_s0 + $0x100] sm:$0xff]  ;;  %v49_v12 = vld [vmem:[%s1682_s0 + $0x110] sm:$0xff]  ;;  %v18_v13 = vld [vmem:[%s1682_s0 + $0x18] sm:$0xff] }
   0x5   :  { %1136 = vmatpush3.bf16.msra.mxu0 %v1133_v3  ;;  %1144 = vmatpush3.bf16.msra.mxu1 %v1133_v3  ;;  %v19_v14 = vld [vmem:[%s1682_s0 + $0x20] sm:$0xff]  ;;  %v50_v15 = vld [vmem:[%s1682_s0 + $0x118] sm:$0xff]  ;;  %v20_v17 = vld [vmem:[%s1682_s0 + $0x28] sm:$0xff] }
   0x6   :  { %1138 = vmatprep.subr.bf16.mxu0 %v1137_v6  ;;  %1142 = vmatprep.subr.bf16.mxu1 %v1137_v6  ;;  %v51_v16 = vld [vmem:[%s1682_s0 + $0x120] sm:$0xff]  ;;  %v21_v18 = vld [vmem:[%s1682_s0 + $0x30] sm:$0xff]  ;;  %v52_v19 = vld [vmem:[%s1682_s0 + $0x128] sm:$0xff] }
   0x7   :  { %1085 = vmatprep.mubr.msk.f32.mxu1 %vm84_vm0, %v47_v10  ;;  %v53_v20 = vld [vmem:[%s1682_s0 + $0x130] sm:$0xff]  ;;  %v22_v21 = vld [vmem:[%s1682_s0 + $0x38] sm:$0xff]  ;;  %v23_v22 = vld [vmem:[%s1682_s0 + $0x40] sm:$0xff] }
   0x8   :  { %v54_v23 = vld [vmem:[%s1682_s0 + $0x138] sm:$0xff] }
   0x9   :  { %1140 = vmatpush3.bf16.msra.mxu0 %v1137_v6  ;;  %1145 = vmatpush3.bf16.msra.mxu1 %v1137_v6 }
   0xa   :  { %1035 = vmatprep.subr.mxu0 %v83_v7  ;;  %1143 = vmatprep.subr.mxu1 %v83_v7 }
   0xd   :  { %1036 = vmatpush3.msra.mxu0 %v83_v7  ;;  %1146 = vmatpush3.msra.mxu1 %v83_v7 }
   0xe   :  { %1038 = vmatmul.mubr.msk.f32.vlgmr.msra.gmra.mrb[0].mxu0 %vm84_vm0, %v16_v8  ;;  %1086 = vmatmul.mubr.msk.f32.vlgmr.msra.gmra.mrb[0].mxu1 %vm84_vm0, %v48_v11 }
   0xf   :  { %1040 = vmatprep.mubr.msk.f32.mxu0 %vm84_vm0, %v17_v9  ;;  %1088 = vmatprep.mubr.msk.f32.mxu1 %vm84_vm0, %v49_v12 }
  0x12   :  { %1041 = vmatmul.mubr.msk.f32.gmra.mrb[2].mxu0 %vm84_vm0, %v18_v13  ;;  %1089 = vmatmul.mubr.msk.f32.gmra.mrb[2].mxu1 %vm84_vm0, %v50_v15 }
  0x13   :  { %1043 = vmatprep.mubr.msk.f32.mxu0 %vm84_vm0, %v19_v14  ;;  %1091 = vmatprep.mubr.msk.f32.mxu1 %vm84_vm0, %v51_v16 }
  0x16   :  { %1044 = vmatmul.mubr.msk.f32.gmra.mrb[4].mxu0 %vm84_vm0, %v20_v17  ;;  %1092 = vmatmul.mubr.msk.f32.gmra.mrb[4].mxu1 %vm84_vm0, %v52_v19 }
  0x17   :  { %1046 = vmatprep.mubr.msk.f32.mxu0 %vm84_vm0, %v21_v18  ;;  %1094 = vmatprep.mubr.msk.f32.mxu1 %vm84_vm0, %v53_v20 }
  0x18   :  { %10 = vsyncpa [#allocation5], 0  ;;  %v55_v24 = vld [vmem:[%s1682_s0 + $0x140] sm:$0xff]  ;;  %v24_v25 = vld [vmem:[%s1682_s0 + $0x48] sm:$0xff]  ;;  %s1198_s11 = smov [#allocation4]  }
  0x19   :  { %v25_v26 = vld [vmem:[%s1682_s0 + $0x50] sm:$0xff]  ;;  %v56_v27 = vld [vmem:[%s1682_s0 + $0x148] sm:$0xff]  ;;  %v26_v29 = vld [vmem:[%s1682_s0 + $0x58] sm:$0xff]  ;;  %s882_s12 = sshll.u32 %s1198_s11, 4  ;;  %s1650_s12 = int_to_ptr.vmem [resolvable:$true] %s882_s12 }
  0x1a   :  { %1047 = vmatmul.mubr.msk.f32.gmra.mrb[6].mxu0 %vm84_vm0, %v22_v21  ;;  %1095 = vmatmul.mubr.msk.f32.gmra.mrb[6].mxu1 %vm84_vm0, %v54_v23  ;;  %v57_v28 = vld [vmem:[%s1682_s0 + $0x150] sm:$0xff]  ;;  %v27_v30 = vld [vmem:[%s1682_s0 + $0x60] sm:$0xff]  ;;  %v58_v31 = vld [vmem:[%s1682_s0 + $0x158] sm:$0xff] }
  0x1b   :  { %1049 = vmatprep.mubr.msk.f32.mxu0 %vm84_vm0, %v23_v22  ;;  %1097 = vmatprep.mubr.msk.f32.mxu1 %vm84_vm0, %v55_v24  ;;  %v59_v32 = vld [vmem:[%s1682_s0 + $0x160] sm:$0xff]  ;;  %v28_v33 = vld [vmem:[%s1682_s0 + $0x68] sm:$0xff]  ;;  %v29_v34 = vld [vmem:[%s1682_s0 + $0x70] sm:$0xff] }
  0x1c   :  { %v60_v35 = vld [vmem:[%s1682_s0 + $0x168] sm:$0xff]  ;;  %v61_v36 = vld [vmem:[%s1682_s0 + $0x170] sm:$0xff]  ;;  %v30_v37 = vld [vmem:[%s1682_s0 + $0x78] sm:$0xff] }
  0x1d   :  { %v31_v38 = vld [vmem:[%s1682_s0 + $0x80] sm:$0xff]  ;;  %v62_v39 = vld [vmem:[%s1682_s0 + $0x178] sm:$0xff]  ;;  %v32_v41 = vld [vmem:[%s1682_s0 + $0x88] sm:$0xff] }
  0x1e   :  { %1050 = vmatmul.mubr.msk.f32.gmra.mrb[8].mxu0 %vm84_vm0, %v24_v25  ;;  %1098 = vmatmul.mubr.msk.f32.gmra.mrb[8].mxu1 %vm84_vm0, %v56_v27  ;;  %v63_v40 = vld [vmem:[%s1682_s0 + $0x180] sm:$0xff]  ;;  %v33_v42 = vld [vmem:[%s1682_s0 + $0x90] sm:$0xff]  ;;  %v64_v43 = vld [vmem:[%s1682_s0 + $0x188] sm:$0xff] }
  0x1f   :  { %1052 = vmatprep.mubr.msk.f32.mxu0 %vm84_vm0, %v25_v26  ;;  %1100 = vmatprep.mubr.msk.f32.mxu1 %vm84_vm0, %v57_v28  ;;  %v65_v44 = vld [vmem:[%s1682_s0 + $0x190] sm:$0xff]  ;;  %v34_v45 = vld [vmem:[%s1682_s0 + $0x98] sm:$0xff]  ;;  %v35_v46 = vld [vmem:[%s1682_s0 + $0xa0] sm:$0xff] }
  0x20   :  { %v66_v47 = vld [vmem:[%s1682_s0 + $0x198] sm:$0xff]  ;;  %v67_v48 = vld [vmem:[%s1682_s0 + $0x1a0] sm:$0xff]  ;;  %v36_v49 = vld [vmem:[%s1682_s0 + $0xa8] sm:$0xff] }
  0x21   :  { %v37_v50 = vld [vmem:[%s1682_s0 + $0xb0] sm:$0xff]  ;;  %v68_v51 = vld [vmem:[%s1682_s0 + $0x1a8] sm:$0xff]  ;;  %v38_v53 = vld [vmem:[%s1682_s0 + $0xb8] sm:$0xff] }
  0x22   :  { %1053 = vmatmul.mubr.msk.f32.gmra.mrb[10].mxu0 %vm84_vm0, %v26_v29  ;;  %1101 = vmatmul.mubr.msk.f32.gmra.mrb[10].mxu1 %vm84_vm0, %v58_v31  ;;  %v69_v52 = vld [vmem:[%s1682_s0 + $0x1b0] sm:$0xff]  ;;  %v39_v54 = vld [vmem:[%s1682_s0 + $0xc0] sm:$0xff]  ;;  %v70_v55 = vld [vmem:[%s1682_s0 + $0x1b8] sm:$0xff] }
  0x23   :  { %1055 = vmatprep.mubr.msk.f32.mxu0 %vm84_vm0, %v27_v30  ;;  %1103 = vmatprep.mubr.msk.f32.mxu1 %vm84_vm0, %v59_v32  ;;  %v71_v56 = vld [vmem:[%s1682_s0 + $0x1c0] sm:$0xff]  ;;  %v40_v57 = vld [vmem:[%s1682_s0 + $0xc8] sm:$0xff]  ;;  %v41_v58 = vld [vmem:[%s1682_s0 + $0xd0] sm:$0xff] }
  0x24   :  { %v72_v59 = vld [vmem:[%s1682_s0 + $0x1c8] sm:$0xff]  ;;  %v73_v60 = vld [vmem:[%s1682_s0 + $0x1d0] sm:$0xff]  ;;  %v42_v61 = vld [vmem:[%s1682_s0 + $0xd8] sm:$0xff] }
  0x25   :  { %v43_v62 = vld [vmem:[%s1682_s0 + $0xe0] sm:$0xff]  ;;  %v74_v63 = vld [vmem:[%s1682_s0 + $0x1d8] sm:$0xff]  ;;  %v44_v1 = vld [vmem:[%s1682_s0 + $0xe8] sm:$0xff] }
  0x26   :  { %1056 = vmatmul.mubr.msk.f32.gmra.mrb[12].mxu0 %vm84_vm0, %v28_v33  ;;  %1104 = vmatmul.mubr.msk.f32.gmra.mrb[12].mxu1 %vm84_vm0, %v60_v35  ;;  %v75_v0 = vld [vmem:[%s1682_s0 + $0x1e0] sm:$0xff]  ;;  %v45_v2 = vld [vmem:[%s1682_s0 + $0xf0] sm:$0xff]  ;;  %v76_v3 = vld [vmem:[%s1682_s0 + $0x1e8] sm:$0xff] }
  0x27   :  { %1058 = vmatprep.mubr.msk.f32.mxu0 %vm84_vm0, %v29_v34  ;;  %1106 = vmatprep.mubr.msk.f32.mxu1 %vm84_vm0, %v61_v36  ;;  %v77_v4 = vld [vmem:[%s1682_s0 + $0x1f0] sm:$0xff]  ;;  %v46_v5 = vld [vmem:[%s1682_s0 + $0xf8] sm:$0xff] }
  0x28   :  { %v78_v6 = vld [vmem:[%s1682_s0 + $0x1f8] sm:$0xff]  ;;  %s1197_s0 = smov [#allocation2]  }
  0x29   :  { %s872_s10 = sshll.u32 %s1197_s0, 4  ;;  %s873_s10 = int_to_ptr.vmem [resolvable:$true] %s872_s10 }
  0x2a   :  { %1059 = vmatmul.mubr.msk.f32.gmra.mrb[14].mxu0 %vm84_vm0, %v30_v37  ;;  %1107 = vmatmul.mubr.msk.f32.gmra.mrb[14].mxu1 %vm84_vm0, %v62_v39  ;;  %s1149_s13 = scalar_lea.vmem %s873_s10, 16  ;;  %s1153_s14 = scalar_lea.vmem %s873_s10, 32 }
  0x2b   :  { %1061 = vmatprep.mubr.msk.f32.mxu0 %vm84_vm0, %v31_v38  ;;  %1109 = vmatprep.mubr.msk.f32.mxu1 %vm84_vm0, %v63_v40  ;;  %p1150_p0 = scmp.ne.s32.totalorder %s873_s10, %s1149_s13  ;;  %p1154_p1 = scmp.lt.s32.totalorder %s873_s10, %s873_s10 }
  0x2c   :  { %p1155_p2 = scmp.lt.s32.totalorder %s1153_s14, %s1149_s13 }
  0x2e   :  { %1062 = vmatmul.mubr.msk.f32.gmra.mrb[16].mxu0 %vm84_vm0, %v32_v41  ;;  %1110 = vmatmul.mubr.msk.f32.gmra.mrb[16].mxu1 %vm84_vm0, %v64_v43  ;;  %p1156_p3 = por %p1155_p2, %p1154_p1 }
  0x2f   :  { %1064 = vmatprep.mubr.msk.f32.mxu0 %vm84_vm0, %v33_v42  ;;  %1112 = vmatprep.mubr.msk.f32.mxu1 %vm84_vm0, %v65_v44 }
  0x30   :  { %p1157_p4 = pnand %p1156_p3, %p1150_p0 }
  0x32   :  { %1065 = vmatmul.mubr.msk.f32.gmra.mrb[18].mxu0 %vm84_vm0, %v34_v45  ;;  %1113 = vmatmul.mubr.msk.f32.gmra.mrb[18].mxu1 %vm84_vm0, %v66_v47 }
  0x33   :  { %1067 = vmatprep.mubr.msk.f32.mxu0 %vm84_vm0, %v35_v46  ;;  %1115 = vmatprep.mubr.msk.f32.mxu1 %vm84_vm0, %v67_v48 }
  0x36   :  { %1068 = vmatmul.mubr.msk.f32.gmra.mrb[20].mxu0 %vm84_vm0, %v36_v49  ;;  %1116 = vmatmul.mubr.msk.f32.gmra.mrb[20].mxu1 %vm84_vm0, %v68_v51 }
  0x37   :  { %1070 = vmatprep.mubr.msk.f32.mxu0 %vm84_vm0, %v37_v50  ;;  %1118 = vmatprep.mubr.msk.f32.mxu1 %vm84_vm0, %v69_v52 }
  0x3a   :  { %1071 = vmatmul.mubr.msk.f32.gmra.mrb[22].mxu0 %vm84_vm0, %v38_v53  ;;  %1119 = vmatmul.mubr.msk.f32.gmra.mrb[22].mxu1 %vm84_vm0, %v70_v55 }
  0x3b   :  { %1073 = vmatprep.mubr.msk.f32.mxu0 %vm84_vm0, %v39_v54  ;;  %1121 = vmatprep.mubr.msk.f32.mxu1 %vm84_vm0, %v71_v56 }
  0x3e   :  { %1074 = vmatmul.mubr.msk.f32.gmra.mrb[24].mxu0 %vm84_vm0, %v40_v57  ;;  %1122 = vmatmul.mubr.msk.f32.gmra.mrb[24].mxu1 %vm84_vm0, %v72_v59 }
  0x3f   :  { %1076 = vmatprep.mubr.msk.f32.mxu0 %vm84_vm0, %v41_v58  ;;  %1124 = vmatprep.mubr.msk.f32.mxu1 %vm84_vm0, %v73_v60 }
  0x42   :  { %1077 = vmatmul.mubr.msk.f32.gmra.mrb[26].mxu0 %vm84_vm0, %v42_v61  ;;  %1125 = vmatmul.mubr.msk.f32.gmra.mrb[26].mxu1 %vm84_vm0, %v74_v63 }
  0x43   :  { %1079 = vmatprep.mubr.msk.f32.mxu0 %vm84_vm0, %v43_v62  ;;  %1127 = vmatprep.mubr.msk.f32.mxu1 %vm84_vm0, %v75_v0 }
  0x46   :  { %1080 = vmatmul.mubr.msk.f32.gmra.mrb[28].mxu0 %vm84_vm0, %v44_v1  ;;  %1128 = vmatmul.mubr.msk.f32.gmra.mrb[28].mxu1 %vm84_vm0, %v76_v3 }
  0x47   :  { %1082 = vmatprep.mubr.msk.f32.mxu0 %vm84_vm0, %v45_v2  ;;  %1130 = vmatprep.mubr.msk.f32.mxu1 %vm84_vm0, %v77_v4 }
  0x4a   :  { %1083 = vmatmul.mubr.msk.f32.gmra.mrb[30].mxu0 %vm84_vm0, %v46_v5  ;;  %1131 = vmatmul.mubr.msk.f32.gmra.mrb[30].mxu1 %vm84_vm0, %v78_v6 }
  0xe1   :  { %v1039_v7 = vpop.f32.mrb[0].mxu0  ;;  %v1490_v10 = vpop.f32.mrb[0].mxu1 }
  0xe2   :  { %v733_v8 = vmul.f32 %v1039_v7, %v1039_v7  ;;  %v343_v9 = vpop.f32.mrb[1].mxu0  ;;  %v1492_v13 = vpop.f32.mrb[1].mxu1 }
  0xe3   :  { %v662_v11 = vadd.f32 %v1039_v7, %v343_v9  ;;  %v732_v12 = vmul.f32 %v343_v9, %v343_v9 }
  0xe5   :  { %v796_v14 = vadd.f32 %v733_v8, %v732_v12  ;;  %v1042_v15 = vpop.f32.mrb[2].mxu0  ;;  %v1494_v17 = vpop.f32.mrb[2].mxu1 }
  0xe6   :  { %v353_v16 = vpop.f32.mrb[3].mxu0  ;;  %v1496_v20 = vpop.f32.mrb[3].mxu1  ;;  %v735_v21 = vmul.f32 %v1042_v15, %v1042_v15 }
  0xe7   :  { %v663_v18 = vadd.f32 %v662_v11, %v353_v16  ;;  %v734_v19 = vmul.f32 %v353_v16, %v353_v16 }
  0xe9   :  { %v797_v22 = vadd.f32 %v796_v14, %v734_v19  ;;  %v1045_v23 = vpop.f32.mrb[4].mxu0  ;;  %v664_v24 = vadd.f32 %v1042_v15, %v663_v18  ;;  %v1498_v26 = vpop.f32.mrb[4].mxu1 }
  0xea   :  { %v363_v25 = vpop.f32.mrb[5].mxu0  ;;  %v1500_v30 = vpop.f32.mrb[5].mxu1  ;;  %v737_v31 = vmul.f32 %v1045_v23, %v1045_v23 }
  0xeb   :  { %v665_v27 = vadd.f32 %v664_v24, %v363_v25  ;;  %v736_v28 = vmul.f32 %v363_v25, %v363_v25  ;;  %v798_v29 = vadd.f32 %v797_v22, %v735_v21 }
  0xed   :  { %v799_v32 = vadd.f32 %v798_v29, %v736_v28  ;;  %v1048_v33 = vpop.f32.mrb[6].mxu0  ;;  %v666_v34 = vadd.f32 %v1045_v23, %v665_v27  ;;  %v1502_v36 = vpop.f32.mrb[6].mxu1 }
  0xee   :  { %v373_v35 = vpop.f32.mrb[7].mxu0  ;;  %v1504_v40 = vpop.f32.mrb[7].mxu1  ;;  %v739_v41 = vmul.f32 %v1048_v33, %v1048_v33 }
  0xef   :  { %v667_v37 = vadd.f32 %v666_v34, %v373_v35  ;;  %v738_v38 = vmul.f32 %v373_v35, %v373_v35  ;;  %v800_v39 = vadd.f32 %v799_v32, %v737_v31 }
  0xf1   :  { %v801_v42 = vadd.f32 %v800_v39, %v738_v38  ;;  %v1051_v43 = vpop.f32.mrb[8].mxu0  ;;  %v668_v44 = vadd.f32 %v1048_v33, %v667_v37  ;;  %v1506_v46 = vpop.f32.mrb[8].mxu1 }
  0xf2   :  { %v383_v45 = vpop.f32.mrb[9].mxu0  ;;  %v1508_v50 = vpop.f32.mrb[9].mxu1  ;;  %v741_v51 = vmul.f32 %v1051_v43, %v1051_v43 }
  0xf3   :  { %v669_v47 = vadd.f32 %v668_v44, %v383_v45  ;;  %v740_v48 = vmul.f32 %v383_v45, %v383_v45  ;;  %v802_v49 = vadd.f32 %v801_v42, %v739_v41 }
  0xf5   :  { %v803_v52 = vadd.f32 %v802_v49, %v740_v48  ;;  %v1054_v53 = vpop.f32.mrb[10].mxu0  ;;  %v670_v54 = vadd.f32 %v1051_v43, %v669_v47  ;;  %v1510_v56 = vpop.f32.mrb[10].mxu1 }
  0xf6   :  { %v393_v55 = vpop.f32.mrb[11].mxu0  ;;  %v1512_v60 = vpop.f32.mrb[11].mxu1  ;;  %v743_v61 = vmul.f32 %v1054_v53, %v1054_v53 }
  0xf7   :  { %v671_v57 = vadd.f32 %v670_v54, %v393_v55  ;;  %v742_v58 = vmul.f32 %v393_v55, %v393_v55  ;;  %v804_v59 = vadd.f32 %v803_v52, %v741_v51 }
  0xf9   :  { %v805_v62 = vadd.f32 %v804_v59, %v742_v58  ;;  %v1057_v63 = vpop.f32.mrb[12].mxu0  ;;  %v672_v0 = vadd.f32 %v1054_v53, %v671_v57  ;;  %v1514_v2 = vpop.f32.mrb[12].mxu1 }
  0xfa   :  { %v403_v1 = vpop.f32.mrb[13].mxu0  ;;  %v1516_v6 = vpop.f32.mrb[13].mxu1  ;;  %v745_v7 = vmul.f32 %v1057_v63, %v1057_v63 }
  0xfb   :  { %v673_v3 = vadd.f32 %v672_v0, %v403_v1  ;;  %v744_v4 = vmul.f32 %v403_v1, %v403_v1  ;;  %v806_v5 = vadd.f32 %v805_v62, %v743_v61 }
  0xfd   :  { %v807_v8 = vadd.f32 %v806_v5, %v744_v4  ;;  %v1060_v9 = vpop.f32.mrb[14].mxu0  ;;  %v674_v11 = vadd.f32 %v1057_v63, %v673_v3  ;;  %v1518_v14 = vpop.f32.mrb[14].mxu1 }
  0xfe   :  { %v413_v12 = vpop.f32.mrb[15].mxu0  ;;  %v1520_v19 = vpop.f32.mrb[15].mxu1  ;;  %v747_v21 = vmul.f32 %v1060_v9, %v1060_v9 }
  0xff   :  { %v675_v15 = vadd.f32 %v674_v11, %v413_v12  ;;  %v746_v16 = vmul.f32 %v413_v12, %v413_v12  ;;  %v808_v18 = vadd.f32 %v807_v8, %v745_v7 }
 0x101   :  { %v809_v22 = vadd.f32 %v808_v18, %v746_v16  ;;  %v1063_v23 = vpop.f32.mrb[16].mxu0  ;;  %v676_v24 = vadd.f32 %v1060_v9, %v675_v15  ;;  %v1522_v27 = vpop.f32.mrb[16].mxu1 }
 0x102   :  { %v423_v25 = vpop.f32.mrb[17].mxu0  ;;  %v1524_v32 = vpop.f32.mrb[17].mxu1  ;;  %v749_v33 = vmul.f32 %v1063_v23, %v1063_v23 }
 0x103   :  { %v677_v28 = vadd.f32 %v676_v24, %v423_v25  ;;  %v748_v29 = vmul.f32 %v423_v25, %v423_v25  ;;  %v810_v31 = vadd.f32 %v809_v22, %v747_v21 }
 0x105   :  { %v811_v34 = vadd.f32 %v810_v31, %v748_v29  ;;  %v1066_v35 = vpop.f32.mrb[18].mxu0  ;;  %v678_v37 = vadd.f32 %v1063_v23, %v677_v28  ;;  %v1526_v39 = vpop.f32.mrb[18].mxu1 }
 0x106   :  { %v433_v38 = vpop.f32.mrb[19].mxu0  ;;  %v1528_v44 = vpop.f32.mrb[19].mxu1  ;;  %v751_v45 = vmul.f32 %v1066_v35, %v1066_v35 }
 0x107   :  { %v679_v41 = vadd.f32 %v678_v37, %v433_v38  ;;  %v750_v42 = vmul.f32 %v433_v38, %v433_v38  ;;  %v812_v43 = vadd.f32 %v811_v34, %v749_v33 }
 0x109   :  { %v813_v47 = vadd.f32 %v812_v43, %v750_v42  ;;  %v1069_v48 = vpop.f32.mrb[20].mxu0  ;;  %v680_v49 = vadd.f32 %v1066_v35, %v679_v41  ;;  %v1530_v52 = vpop.f32.mrb[20].mxu1 }
 0x10a   :  { %v443_v51 = vpop.f32.mrb[21].mxu0  ;;  %v1532_v57 = vpop.f32.mrb[21].mxu1  ;;  %v753_v58 = vmul.f32 %v1069_v48, %v1069_v48 }
 0x10b   :  { %v681_v53 = vadd.f32 %v680_v49, %v443_v51  ;;  %v752_v54 = vmul.f32 %v443_v51, %v443_v51  ;;  %v814_v55 = vadd.f32 %v813_v47, %v751_v45 }
 0x10d   :  { %v815_v59 = vadd.f32 %v814_v55, %v752_v54  ;;  %v1072_v61 = vpop.f32.mrb[22].mxu0  ;;  %v682_v62 = vadd.f32 %v1069_v48, %v681_v53  ;;  %v1534_v0 = vpop.f32.mrb[22].mxu1 }
 0x10e   :  { %v453_v63 = vpop.f32.mrb[23].mxu0  ;;  %v1536_v5 = vpop.f32.mrb[23].mxu1  ;;  %v755_v7 = vmul.f32 %v1072_v61, %v1072_v61 }
 0x10f   :  { %v683_v1 = vadd.f32 %v682_v62, %v453_v63  ;;  %v754_v3 = vmul.f32 %v453_v63, %v453_v63  ;;  %v816_v4 = vadd.f32 %v815_v59, %v753_v58 }
 0x111   :  { %v817_v8 = vadd.f32 %v816_v4, %v754_v3  ;;  %v1075_v9 = vpop.f32.mrb[24].mxu0  ;;  %v684_v11 = vadd.f32 %v1072_v61, %v683_v1  ;;  %v1538_v15 = vpop.f32.mrb[24].mxu1 }
 0x112   :  { %v463_v12 = vpop.f32.mrb[25].mxu0  ;;  %v1540_v22 = vpop.f32.mrb[25].mxu1  ;;  %v757_v23 = vmul.f32 %v1075_v9, %v1075_v9 }
 0x113   :  { %v685_v16 = vadd.f32 %v684_v11, %v463_v12  ;;  %v756_v18 = vmul.f32 %v463_v12, %v463_v12  ;;  %v818_v21 = vadd.f32 %v817_v8, %v755_v7  ;;  %v764_v11 = vmul.f32 %v1492_v13, %v1492_v13 }
 0x115   :  { %v819_v24 = vadd.f32 %v818_v21, %v756_v18  ;;  %v1078_v25 = vpop.f32.mrb[26].mxu0  ;;  %v686_v28 = vadd.f32 %v1075_v9, %v685_v16  ;;  %v1542_v31 = vpop.f32.mrb[26].mxu1  ;;  %v765_v18 = vmul.f32 %v1490_v10, %v1490_v10 }
 0x116   :  { %v473_v29 = vpop.f32.mrb[27].mxu0  ;;  %v1544_v37 = vpop.f32.mrb[27].mxu1  ;;  %v759_v38 = vmul.f32 %v1078_v25, %v1078_v25 }
 0x117   :  { %v687_v33 = vadd.f32 %v686_v28, %v473_v29  ;;  %v758_v34 = vmul.f32 %v473_v29, %v473_v29  ;;  %v820_v35 = vadd.f32 %v819_v24, %v757_v23  ;;  %v766_v24 = vmul.f32 %v1496_v20, %v1496_v20 }
 0x118   :  { %v767_v29 = vmul.f32 %v1494_v17, %v1494_v17 }
 0x119   :  { %v821_v41 = vadd.f32 %v820_v35, %v758_v34  ;;  %v1081_v42 = vpop.f32.mrb[28].mxu0  ;;  %v688_v43 = vadd.f32 %v1078_v25, %v687_v33  ;;  %v1546_v47 = vpop.f32.mrb[28].mxu1 }
 0x11a   :  { %v483_v45 = vpop.f32.mrb[29].mxu0  ;;  %v1548_v53 = vpop.f32.mrb[29].mxu1  ;;  %v761_v54 = vmul.f32 %v1081_v42, %v1081_v42 }
 0x11b   :  { %v689_v48 = vadd.f32 %v688_v43, %v483_v45  ;;  %v760_v49 = vmul.f32 %v483_v45, %v483_v45  ;;  %v822_v51 = vadd.f32 %v821_v41, %v759_v38 }
 0x11d   :  { %v823_v55 = vadd.f32 %v822_v51, %v760_v49  ;;  %v1084_v58 = vpop.f32.mrb[30].mxu0  ;;  %v690_v59 = vadd.f32 %v1081_v42, %v689_v48  ;;  %v1550_v62 = vpop.f32.mrb[30].mxu1 }
 0x11e   :  { %v493_v61 = vpop.f32.mrb[31].mxu0  ;;  %v1552_v4 = vpop.f32.mrb[31].mxu1  ;;  %v763_v7 = vmul.f32 %v1084_v58, %v1084_v58 }
 0x11f   :  { %v691_v63 = vadd.f32 %v690_v59, %v493_v61  ;;  %v762_v1 = vmul.f32 %v493_v61, %v493_v61  ;;  %v824_v3 = vadd.f32 %v823_v55, %v761_v54 }
 0x121   :  { %v692_v8 = vadd.f32 %v1084_v58, %v691_v63  ;;  %v825_v9 = vadd.f32 %v824_v3, %v762_v1 }
 0x123   :  { %v826_v12 = vadd.f32 %v825_v9, %v763_v7  ;;  %v693_v16 = vadd.f32 %v692_v8, %v1492_v13  ;;  %v768_v13 = vmul.f32 %v1500_v30, %v1500_v30 }
 0x125   :  { %v827_v21 = vadd.f32 %v826_v12, %v764_v11  ;;  %v694_v23 = vadd.f32 %v1490_v10, %v693_v16  ;;  %v769_v10 = vmul.f32 %v1498_v26, %v1498_v26 }
 0x127   :  { %v695_v25 = vadd.f32 %v694_v23, %v1496_v20  ;;  %v828_v28 = vadd.f32 %v827_v21, %v765_v18  ;;  %v770_v20 = vmul.f32 %v1504_v40, %v1504_v40 }
 0x129   :  { %v829_v33 = vadd.f32 %v828_v28, %v766_v24  ;;  %v696_v34 = vadd.f32 %v1494_v17, %v695_v25  ;;  %v771_v17 = vmul.f32 %v1502_v36, %v1502_v36 }
 0x12b   :  { %v697_v35 = vadd.f32 %v696_v34, %v1500_v30  ;;  %v830_v38 = vadd.f32 %v829_v33, %v767_v29  ;;  %v772_v30 = vmul.f32 %v1508_v50, %v1508_v50 }
 0x12d   :  { %v831_v41 = vadd.f32 %v830_v38, %v768_v13  ;;  %v698_v42 = vadd.f32 %v1498_v26, %v697_v35  ;;  %v773_v26 = vmul.f32 %v1506_v46, %v1506_v46 }
 0x12f   :  { %v699_v43 = vadd.f32 %v698_v42, %v1504_v40  ;;  %v832_v45 = vadd.f32 %v831_v41, %v769_v10  ;;  %v774_v40 = vmul.f32 %v1512_v60, %v1512_v60 }
 0x131   :  { %v833_v48 = vadd.f32 %v832_v45, %v770_v20  ;;  %v700_v49 = vadd.f32 %v1502_v36, %v699_v43  ;;  %v775_v36 = vmul.f32 %v1510_v56, %v1510_v56 }
 0x133   :  { %v701_v51 = vadd.f32 %v700_v49, %v1508_v50  ;;  %v834_v54 = vadd.f32 %v833_v48, %v771_v17  ;;  %v776_v50 = vmul.f32 %v1516_v6, %v1516_v6 }
 0x135   :  { %v835_v55 = vadd.f32 %v834_v54, %v772_v30  ;;  %v702_v58 = vadd.f32 %v1506_v46, %v701_v51  ;;  %v777_v46 = vmul.f32 %v1514_v2, %v1514_v2 }
 0x137   :  { %v703_v59 = vadd.f32 %v702_v58, %v1512_v60  ;;  %v836_v61 = vadd.f32 %v835_v55, %v773_v26  ;;  %v778_v60 = vmul.f32 %v1520_v19, %v1520_v19 }
 0x139   :  { %v837_v63 = vadd.f32 %v836_v61, %v774_v40  ;;  %v704_v1 = vadd.f32 %v1510_v56, %v703_v59  ;;  %v779_v56 = vmul.f32 %v1518_v14, %v1518_v14 }
 0x13b   :  { %v705_v3 = vadd.f32 %v704_v1, %v1516_v6  ;;  %v838_v7 = vadd.f32 %v837_v63, %v775_v36  ;;  %v780_v6 = vmul.f32 %v1524_v32, %v1524_v32 }
 0x13d   :  { %v839_v8 = vadd.f32 %v838_v7, %v776_v50  ;;  %v706_v9 = vadd.f32 %v1514_v2, %v705_v3  ;;  %v781_v2 = vmul.f32 %v1522_v27, %v1522_v27 }
 0x13f   :  { %v707_v11 = vadd.f32 %v706_v9, %v1520_v19  ;;  %v840_v12 = vadd.f32 %v839_v8, %v777_v46  ;;  %v782_v19 = vmul.f32 %v1528_v44, %v1528_v44 }
 0x141   :  { %v841_v16 = vadd.f32 %v840_v12, %v778_v60  ;;  %v708_v18 = vadd.f32 %v1518_v14, %v707_v11  ;;  %v783_v14 = vmul.f32 %v1526_v39, %v1526_v39 }
 0x143   :  { %v709_v21 = vadd.f32 %v708_v18, %v1524_v32  ;;  %v842_v23 = vadd.f32 %v841_v16, %v779_v56  ;;  %v784_v32 = vmul.f32 %v1532_v57, %v1532_v57 }
 0x145   :  { %v843_v24 = vadd.f32 %v842_v23, %v780_v6  ;;  %v710_v25 = vadd.f32 %v1522_v27, %v709_v21  ;;  %v785_v27 = vmul.f32 %v1530_v52, %v1530_v52 }
 0x147   :  { %v711_v28 = vadd.f32 %v710_v25, %v1528_v44  ;;  %v844_v29 = vadd.f32 %v843_v24, %v781_v2  ;;  %v786_v44 = vmul.f32 %v1536_v5, %v1536_v5 }
 0x149   :  { %v845_v33 = vadd.f32 %v844_v29, %v782_v19  ;;  %v712_v34 = vadd.f32 %v1526_v39, %v711_v28  ;;  %v787_v39 = vmul.f32 %v1534_v0, %v1534_v0 }
 0x14b   :  { %v713_v13 = vadd.f32 %v712_v34, %v1532_v57  ;;  %v846_v35 = vadd.f32 %v845_v33, %v783_v14  ;;  %v788_v57 = vmul.f32 %v1540_v22, %v1540_v22 }
 0x14d   :  { %v847_v38 = vadd.f32 %v846_v35, %v784_v32  ;;  %v714_v10 = vadd.f32 %v1530_v52, %v713_v13  ;;  %v789_v52 = vmul.f32 %v1538_v15, %v1538_v15 }
 0x14f   :  { %v715_v41 = vadd.f32 %v714_v10, %v1536_v5  ;;  %v848_v42 = vadd.f32 %v847_v38, %v785_v27  ;;  %v790_v5 = vmul.f32 %v1544_v37, %v1544_v37 }
 0x151   :  { %v849_v20 = vadd.f32 %v848_v42, %v786_v44  ;;  %v716_v43 = vadd.f32 %v1534_v0, %v715_v41  ;;  %v791_v0 = vmul.f32 %v1542_v31, %v1542_v31 }
 0x153   :  { %v717_v45 = vadd.f32 %v716_v43, %v1540_v22  ;;  %v850_v17 = vadd.f32 %v849_v20, %v787_v39  ;;  %v792_v22 = vmul.f32 %v1548_v53, %v1548_v53 }
 0x155   :  { %v851_v48 = vadd.f32 %v850_v17, %v788_v57  ;;  %v718_v49 = vadd.f32 %v1538_v15, %v717_v45  ;;  %v793_v15 = vmul.f32 %v1546_v47, %v1546_v47 }
 0x157   :  { %v719_v30 = vadd.f32 %v718_v49, %v1544_v37  ;;  %v852_v51 = vadd.f32 %v851_v48, %v789_v52  ;;  %v794_v37 = vmul.f32 %v1552_v4, %v1552_v4 }
 0x159   :  { %v853_v54 = vadd.f32 %v852_v51, %v790_v5  ;;  %v720_v26 = vadd.f32 %v1542_v31, %v719_v30  ;;  %v795_v31 = vmul.f32 %v1550_v62, %v1550_v62 }
 0x15b   :  { %v721_v55 = vadd.f32 %v720_v26, %v1548_v53  ;;  %v854_v58 = vadd.f32 %v853_v54, %v791_v0 }
 0x15d   :  { %v855_v40 = vadd.f32 %v854_v58, %v792_v22  ;;  %v722_v59 = vadd.f32 %v1546_v47, %v721_v55 }
 0x15f   :  { %v723_v61 = vadd.f32 %v722_v59, %v1552_v4  ;;  %v856_v36 = vadd.f32 %v855_v40, %v793_v15 }
 0x161   :  { %v724_v63 = vadd.f32 %v1550_v62, %v723_v61  ;;  %v857_v1 = vadd.f32 %v856_v36, %v794_v37 }
 0x163   :  { %v725_v53 = vrot.slane %v724_v63, 4  ;;  %v858_v50 = vadd.f32 %v857_v1, %v795_v31 }
 0x165   :  { %v726_v3 = vadd.f32 %v725_v53, %v724_v63  ;;  %v859_v7 = vrot.slane %v858_v50, 4 }
 0x167   :  { %v727_v46 = vrot.slane %v726_v3, 2  ;;  %v860_v8 = vadd.f32 %v859_v7, %v858_v50 }
 0x169   :  { %v728_v9 = vadd.f32 %v727_v46, %v726_v3  ;;  %v861_v47 = vrot.slane %v860_v8, 2 }
 0x16b   :  { %v729_v60 = vrot.slane %v728_v9, 1  ;;  %v862_v11 = vadd.f32 %v861_v47, %v860_v8 }
 0x16d   :  { %v730_v4 = vadd.f32 %v729_v60, %v728_v9  ;;  %v863_v12 = vrot.slane %v862_v11, 1 }
 0x16f   :  { %731 = vst [vmem:[#allocation2] sm:$0x1] %v730_v4  ;;  %v864_v62 = vadd.f32 %v863_v12, %v862_v11 }
 0x170   :  { %1160 = shalt.err (!%p1157_p4)
}
 0x171   :  { %s1161_s17 = scalar_lea.hbm %s1684_s2, 16 }
 0x172   :  { %p1162_p5 = scmp.ne.s32.totalorder %s1684_s2, %s1161_s17  ;;  %p1165_p6 = scmp.lt.u32.totalorder %s1161_s17, %s1684_s2 }
 0x174   :  { %p1167_p7 = pnand %p1165_p6, %p1162_p5 }
 0x176   :  { %1170 = shalt.err (!%p1167_p7)
}
 0x177   :  { %875 = dma.vmem_to_hbm [thread:$0]  %s873_s10, 16, %s1684_s2, [#allocation3]   ;;  %865 = vst [vmem:[#allocation4] sm:$0x1] %v864_v62 }
 0x178   :  { %s1171_s24 = scalar_lea.vmem %s1650_s12, 16  ;;  %s1175_s25 = scalar_lea.vmem %s1650_s12, 32 }
 0x179   :  { %p1172_p8 = scmp.ne.s32.totalorder %s1650_s12, %s1171_s24  ;;  %p1176_p9 = scmp.lt.s32.totalorder %s1650_s12, %s1650_s12 }
 0x17a   :  { %p1177_p10 = scmp.lt.s32.totalorder %s1175_s25, %s1171_s24 }
 0x17c   :  { %p1178_p11 = por %p1177_p10, %p1176_p9 }
 0x17e   :  { %p1179_p12 = pnand %p1178_p11, %p1172_p8 }
 0x180   :  { %1182 = shalt.err (!%p1179_p12)
}
 0x181   :  { %s1183_s28 = scalar_lea.hbm %s1685_s3, 16 }
 0x182   :  { %p1184_p13 = scmp.ne.s32.totalorder %s1685_s3, %s1183_s28  ;;  %p1187_p0 = scmp.lt.u32.totalorder %s1183_s28, %s1685_s3 }
 0x184   :  { %p1189_p1 = pnand %p1187_p0, %p1184_p13 }
 0x186   :  { %1192 = shalt.err (!%p1189_p1)
}
 0x187   :  { %885 = dma.vmem_to_hbm [thread:$0]  %s1650_s12, 16, %s1685_s3, [#allocation5]  }
 0x188   :  { %1193 = dma.done.wait [#allocation3], 16  }
 0x189   :  { %1194 = vsyncadd [#allocation3], 4294967280 }
 0x18a   :  { %1195 = dma.done.wait [#allocation5], 16  }
 0x18b   :  { %1196 = vsyncadd [#allocation5], 4294967280 }
 0x18c   :  { %892 = vsyncpa [#allocation3], 1 }
 0x18d   :  { %893 = vsyncpa [#allocation5], 1 }

</bundles_post_ra>
